<compile_context>
chip_gen: v6e
topology: v6e:2x2x1
jax: 0.10.0
libtpu: 0.0.40
codegen_flags: <defaults>
</compile_context>

<pallas_src>
import jax
import jax.numpy as jnp
from jax.experimental import pallas as pl
from jax.experimental.pallas import tpu as pltpu


def conv_bn_prelu_kernel(patch_ref, w_ref, bias_ref, alpha_ref, o_ref):
    """Single-invocation fused Conv (im2col matmul) + BatchNorm + PReLU.

    patch_ref : (N, K*K*Cin, HW)  VMEM  im2col patches, channel-major (cin, ky, kx)
    w_ref     : (Cout, K*K*Cin)   VMEM  BN-scale-folded conv weights
    bias_ref  : (Cout, 1)         VMEM  folded conv-bias + BN shift
    alpha_ref : (1,)              SMEM  PReLU slope (shared scalar)
    o_ref     : (N, Cout, HW)     VMEM  lane-dense output (HW is a multiple of 128)
    """
    alpha = alpha_ref[0]
    w = w_ref[...]
    b = bias_ref[...]
    n_batch = patch_ref.shape[0]
    for n in range(n_batch):  # static, unrolled (N == 2)
        # One MXU matmul per image: conv fully folded with BN scale.
        y = jnp.dot(w, patch_ref[n], preferred_element_type=jnp.float32)
        y = y + b                                    # folded bias: VPU broadcast-add
        o_ref[n] = jnp.where(y >= 0.0, y, alpha * y).astype(o_ref.dtype)


def convolutional_block(x_nchw, weight_oihw, conv_bias, gamma, beta,
                        run_mean, run_var, prelu_alpha,
                        *, kernel_size, stride=1, eps=1e-5):
    """Forward of ConvolutionalBlock(in, out, k, stride, batch_norm=True, 'prelu')."""
    # TODO(synk): training-mode BatchNorm (batch stats + momentum update) is not
    # reproduced; inference-mode running stats are folded into the weights.
    N, Cin, H, W = x_nchw.shape
    Cout = weight_oihw.shape[0]
    K = kernel_size
    p = K // 2

    x = x_nchw.astype(jnp.float32)

    # im2col in a single XLA op. Output channel ordering is (cin, ky, kx) with
    # cin major, which matches a plain reshape of the PyTorch OIHW weight.
    patches = jax.lax.conv_general_dilated_patches(
        x, filter_shape=(K, K), window_strides=(stride, stride),
        padding=[(p, p), (p, p)],
        dimension_numbers=('NCHW', 'OIHW', 'NCHW'),
        precision=jax.lax.Precision.HIGHEST)
    _, KKC, H_out, W_out = patches.shape            # KKC = Cin * K * K
    HW = H_out * W_out
    patch = patches.reshape(N, KKC, HW)             # contiguous -> free reshape

    # Fold conv bias + inference-mode BatchNorm into weight / bias:
    #   y = (scale * W) @ patch + [(conv_b - mean) * scale + beta]
    scale = gamma / jnp.sqrt(run_var + eps)                               # (Cout,)
    w = weight_oihw.reshape(Cout, KKC).astype(jnp.float32) * scale[:, None]
    bias = ((conv_bias - run_mean) * scale + beta).astype(jnp.float32)
    bias = bias.reshape(Cout, 1)

    # TODO(synk): PReLU assumed to use the default single shared parameter; a
    # per-channel alpha would become a (Cout, 1) VMEM operand instead.
    alpha = jnp.asarray(prelu_alpha, jnp.float32).reshape(1)

    # TODO(synk): for much larger H*W, add an HW-parallel grid axis with
    # lane-dense tiles (and in-kernel DMA im2col) instead of this single step.
    out = pl.pallas_call(
        conv_bn_prelu_kernel,
        out_shape=jax.ShapeDtypeStruct((N, Cout, HW), jnp.float32),
        in_specs=[
            pl.BlockSpec(memory_space=pltpu.MemorySpace.VMEM),   # patches
            pl.BlockSpec(memory_space=pltpu.MemorySpace.VMEM),   # folded weights
            pl.BlockSpec(memory_space=pltpu.MemorySpace.VMEM),   # folded bias
            pl.BlockSpec(memory_space=pltpu.MemorySpace.SMEM),   # prelu alpha
        ],
        out_specs=pl.BlockSpec(memory_space=pltpu.MemorySpace.VMEM),
    )(patch, w, bias, alpha)

    # (N, Cout, H*W) -> (N, Cout, H, W): plain reshape, no transpose needed.
    return out.reshape(N, Cout, H_out, W_out)


def reference(x_nchw, weight_oihw, conv_bias, gamma, beta, run_mean, run_var,
              prelu_alpha, *, kernel_size, stride=1, eps=1e-5):
    """Pure-JAX reference of the same forward pass."""
    p = kernel_size // 2
    y = jax.lax.conv_general_dilated(
        x_nchw, weight_oihw, window_strides=(stride, stride),
        padding=[(p, p), (p, p)],
        dimension_numbers=('NCHW', 'OIHW', 'NCHW'),
        precision=jax.lax.Precision.HIGHEST)
    y = y + conv_bias.reshape(1, -1, 1, 1)
    scale = (gamma / jnp.sqrt(run_var + eps)).reshape(1, -1, 1, 1)
    y = (y - run_mean.reshape(1, -1, 1, 1)) * scale + beta.reshape(1, -1, 1, 1)
    return jnp.where(y >= 0, y, prelu_alpha * y)


if __name__ == "__main__":
    # Small deterministic config consistent with the module's forward.
    N, Cin, Cout, H, W, K = 2, 4, 8, 16, 16, 3

    key = jax.random.PRNGKey(0)
    k_x, k_w, k_b, k_g, k_be, k_m, k_v = jax.random.split(key, 7)

    x = jax.random.normal(k_x, (N, Cin, H, W), jnp.float32)

    # Conv2d params (deterministic synthetic init).
    weight = jax.random.normal(k_w, (Cout, Cin, K, K), jnp.float32) * 0.1
    conv_bias = jax.random.normal(k_b, (Cout,), jnp.float32) * 0.1

    # BatchNorm2d params (inference-mode semantics with synthetic stats).
    gamma = 1.0 + 0.1 * jax.random.normal(k_g, (Cout,), jnp.float32)
    beta = 0.1 * jax.random.normal(k_be, (Cout,), jnp.float32)
    run_mean = 0.1 * jax.random.normal(k_m, (Cout,), jnp.float32)
    run_var = 0.5 + jnp.abs(jax.random.normal(k_v, (Cout,), jnp.float32))

    # PReLU default single shared parameter.
    prelu_alpha = 0.25

    out = convolutional_block(x, weight, conv_bias, gamma, beta,
                              run_mean, run_var, prelu_alpha,
                              kernel_size=K, stride=1)
    out = jax.block_until_ready(out)

    ref = reference(x, weight, conv_bias, gamma, beta, run_mean, run_var,
                    prelu_alpha, kernel_size=K, stride=1)

    assert out.shape == (N, Cout, H, W), out.shape
    # Tolerance leaves headroom for MXU vs. XLA-conv accumulation differences.
    assert jnp.allclose(out, ref, atol=1e-3, rtol=1e-3), \
        float(jnp.max(jnp.abs(out - ref)))

    print("KERNEL_OK")
</pallas_src>

<mosaic_0001>
module attributes {stable_mosaic.version = 11 : i64} {
  func.func @conv_bn_prelu_kernel(%arg0: memref<2x36x256xf32, #tpu.memory_space<vmem>>, %arg1: memref<8x36xf32, #tpu.memory_space<vmem>>, %arg2: memref<8x1xf32, #tpu.memory_space<vmem>>, %arg3: memref<1xf32, #tpu.memory_space<smem>>, %arg4: memref<2x8x256xf32, #tpu.memory_space<vmem>>) attributes {dimension_semantics = [], scalar_prefetch = 0 : i64, scratch_operands = 0 : i64, tpu.core_type = #tpu.core_type<tc>} {
    %c0 = arith.constant 0 : index
    %0 = memref.load %arg3[%c0] : memref<1xf32, #tpu.memory_space<smem>>
    %c0_0 = arith.constant 0 : index
    %c0_1 = arith.constant 0 : index
    %1 = vector.load %arg1[%c0_0, %c0_1] : memref<8x36xf32, #tpu.memory_space<vmem>>, vector<8x36xf32>
    %c0_2 = arith.constant 0 : index
    %c0_3 = arith.constant 0 : index
    %2 = vector.load %arg2[%c0_2, %c0_3] : memref<8x1xf32, #tpu.memory_space<vmem>>, vector<8x1xf32>
    %c0_4 = arith.constant 0 : index
    %c0_5 = arith.constant 0 : index
    %c0_6 = arith.constant 0 : index
    %3 = vector.load %arg0[%c0_4, %c0_5, %c0_6] : memref<2x36x256xf32, #tpu.memory_space<vmem>>, vector<1x36x256xf32>
    %4 = vector.shape_cast %3 : vector<1x36x256xf32> to vector<36x256xf32>
    %cst = arith.constant dense<0.000000e+00> : vector<8x256xf32>
    %5 = tpu.matmul %1, %4, %cst {dimension_numbers = #tpu.dot_dimension_numbers<[1], [0], [0], [1], [0, 0, 1, 1], [], []>} : vector<8x36xf32>, vector<36x256xf32>, vector<8x256xf32> -> vector<8x256xf32>
    %6 = vector.broadcast %2 : vector<8x1xf32> to vector<8x256xf32>
    %7 = arith.addf %5, %6 : vector<8x256xf32>
    %cst_7 = arith.constant 0.000000e+00 : f32
    %8 = vector.broadcast %cst_7 : f32 to vector<8x256xf32>
    %9 = arith.cmpf oge, %7, %8 : vector<8x256xf32>
    %10 = vector.broadcast %0 : f32 to vector<8x256xf32>
    %11 = arith.mulf %10, %7 : vector<8x256xf32>
    %12 = arith.select %9, %7, %11 : vector<8x256xi1>, vector<8x256xf32>
    %c0_8 = arith.constant 0 : index
    %c0_9 = arith.constant 0 : index
    %c0_10 = arith.constant 0 : index
    %13 = vector.load %arg4[%c0_8, %c0_9, %c0_10] : memref<2x8x256xf32, #tpu.memory_space<vmem>>, vector<1x8x256xf32>
    %14 = vector.shape_cast %13 : vector<1x8x256xf32> to vector<8x256xf32>
    %15 = vector.shape_cast %12 : vector<8x256xf32> to vector<1x8x256xf32>
    tpu.vector_store %arg4[%c0_8, %c0_9, %c0_10], %15 {strides = array<i32>} : memref<2x8x256xf32, #tpu.memory_space<vmem>>, vector<1x8x256xf32>,
    %c1 = arith.constant 1 : index
    %c0_11 = arith.constant 0 : index
    %c0_12 = arith.constant 0 : index
    %16 = vector.load %arg0[%c1, %c0_11, %c0_12] : memref<2x36x256xf32, #tpu.memory_space<vmem>>, vector<1x36x256xf32>
    %17 = vector.shape_cast %16 : vector<1x36x256xf32> to vector<36x256xf32>
    %cst_13 = arith.constant dense<0.000000e+00> : vector<8x256xf32>
    %18 = tpu.matmul %1, %17, %cst_13 {dimension_numbers = #tpu.dot_dimension_numbers<[1], [0], [0], [1], [0, 0, 1, 1], [], []>} : vector<8x36xf32>, vector<36x256xf32>, vector<8x256xf32> -> vector<8x256xf32>
    %19 = vector.broadcast %2 : vector<8x1xf32> to vector<8x256xf32>
    %20 = arith.addf %18, %19 : vector<8x256xf32>
    %cst_14 = arith.constant 0.000000e+00 : f32
    %21 = vector.broadcast %cst_14 : f32 to vector<8x256xf32>
    %22 = arith.cmpf oge, %20, %21 : vector<8x256xf32>
    %23 = vector.broadcast %0 : f32 to vector<8x256xf32>
    %24 = arith.mulf %23, %20 : vector<8x256xf32>
    %25 = arith.select %22, %20, %24 : vector<8x256xi1>, vector<8x256xf32>
    %c1_15 = arith.constant 1 : index
    %c0_16 = arith.constant 0 : index
    %c0_17 = arith.constant 0 : index
    %26 = vector.load %arg4[%c1_15, %c0_16, %c0_17] : memref<2x8x256xf32, #tpu.memory_space<vmem>>, vector<1x8x256xf32>
    %27 = vector.shape_cast %26 : vector<1x8x256xf32> to vector<8x256xf32>
    %28 = vector.shape_cast %25 : vector<8x256xf32> to vector<1x8x256xf32>
    tpu.vector_store %arg4[%c1_15, %c0_16, %c0_17], %28 {strides = array<i32>} : memref<2x8x256xf32, #tpu.memory_space<vmem>>, vector<1x8x256xf32>,
    return
  }
}

</mosaic_0001>

<bundles_post_ra>
// kernel: tpu_custom_call.1
= control target key start
LH: loop header
LB: loop body
LE: loop exit
PB: predicated region body
PF: predicated region fallthrough
CT: control target
= control target key end

     0   :  { %vm41_vm0 = vcmask 1043456   ;;  %s387_s0 = inlined_call_operand.vmem [shape: f32[2,36,256], index: 0, kind: input, shape index: {}]   ;;  %s388_s1 = inlined_call_operand.vmem [shape: f32[8,36], index: 1, kind: input, shape index: {}]   ;;  %s389_s2 = inlined_call_operand.vmem [shape: f32[8,1], index: 2, kind: input, shape index: {}]   ;;  %s390_s3 = inlined_call_operand.<no memory space> [shape: f32[1], index: 3, kind: input, shape index: {}]   ;;  %s391_s4 = inlined_call_operand.hbm [shape: f32[2,8,256], index: 4, kind: output, shape index: {}]  }
   0x1   :  { %v31_v0 = vld [vmem:[%s387_s0 + $0x48] sm:$0xf]  ;;  %v253_v1 = vld [vmem:[%s387_s0 + $0x98] sm:$0xf]  ;;  %v30_v3 = vld [vmem:[%s387_s0 + $0x40] sm:$0xf] }
   0x2   :  { %v29_v2 = vld [vmem:[%s387_s0 + $0x38] sm:$0xff]  ;;  %241 = vmatprep.subr.msk.mxu0 %vm41_vm0, %v31_v0  ;;  %254 = vmatprep.subr.msk.mxu1 %vm41_vm0, %v253_v1  ;;  %v252_v4 = vld [vmem:[%s387_s0 + $0x90] sm:$0xf]  ;;  %v251_v5 = vld [vmem:[%s387_s0 + $0x88] sm:$0xff] }
   0x3   :  { %242 = vmatpush1.msk.msra.mxu0 %vm41_vm0, %v30_v3  ;;  %255 = vmatpush1.msk.msra.mxu1 %vm41_vm0, %v252_v4  ;;  %v28_v6 = vld [vmem:[%s387_s0 + $0x30] sm:$0xff]  ;;  %v250_v7 = vld [vmem:[%s387_s0 + $0x80] sm:$0xff]  ;;  %v27_v8 = vld [vmem:[%s387_s0 + $0x28] sm:$0xff] }
   0x4   :  { %72 = vmatprep.subr.mxu0 %v29_v2  ;;  %169 = vmatprep.subr.mxu1 %v251_v5  ;;  %v249_v9 = vld [vmem:[%s387_s0 + $0x78] sm:$0xff]  ;;  %v26_v10 = vld [vmem:[%s387_s0 + $0x20] sm:$0xff]  ;;  %v248_v11 = vld [vmem:[%s387_s0 + $0x70] sm:$0xff] }
   0x5   :  { %73 = vmatpush1.msra.mxu0 %v28_v6  ;;  %170 = vmatpush1.msra.mxu1 %v250_v7  ;;  %v25_v12 = vld [vmem:[%s387_s0 + $0x18] sm:$0xff]  ;;  %v247_v13 = vld [vmem:[%s387_s0 + $0x68] sm:$0xff]  ;;  %v24_v14 = vld [vmem:[%s387_s0 + $0x10] sm:$0xff] }
   0x6   :  { %74 = vmatprep.subr.mxu0 %v27_v8  ;;  %171 = vmatprep.subr.mxu1 %v249_v9  ;;  %v246_v15 = vld [vmem:[%s387_s0 + $0x60] sm:$0xff]  ;;  %v23_v16 = vld [vmem:[%s387_s0 + $0x8] sm:$0xff]  ;;  %v245_v17 = vld [vmem:[%s387_s0 + $0x58] sm:$0xff] }
   0x7   :  { %75 = vmatpush1.msra.mxu0 %v26_v10  ;;  %172 = vmatpush1.msra.mxu1 %v248_v11  ;;  %v22_v18 = vld [vmem:[%s387_s0] sm:$0xff] }
   0x8   :  { %76 = vmatprep.subr.mxu0 %v25_v12  ;;  %173 = vmatprep.subr.mxu1 %v247_v13 }
   0x9   :  { %10 = vsyncpa [#allocation4], 0  ;;  %77 = vmatpush1.msra.mxu0 %v24_v14  ;;  %174 = vmatpush1.msra.mxu1 %v246_v15  ;;  %v244_v19 = vld [vmem:[%s387_s0 + $0x50] sm:$0xff]  ;;  %v20_v20 = vld [vmem:[%s388_s1] sm:$0xff]  ;;  %vm37_vm1 = vcmask 293888   ;;  %v285_v21 = vmov 0.0   ;;  %v121_v26 = vstv %s390_s3 }
   0xa   :  { %78 = vmatprep.subr.mxu0 %v23_v16  ;;  %175 = vmatprep.subr.mxu1 %v245_v17  ;;  %v21_v22 = vld [vmem:[%s389_s2] sm:$0xff]  ;;  %v286_v23 = vmov 0   ;;  %s287_s1 = smov [#allocation3]  }
   0xb   :  { %79 = vmatpush1.msra.mxu0 %v22_v18  ;;  %112 = vmatprep.mubr.f32.mxu0 %v285_v21  ;;  %s230_s2 = sshll.u32 %s287_s1, 4  ;;  %s231_s2 = int_to_ptr.vmem [resolvable:$true] %s230_s2 }
   0xc   :  { %176 = vmatpush1.msra.mxu1 %v244_v19  ;;  %209 = vmatprep.mubr.f32.mxu1 %v285_v21  ;;  %s263_s3 = scalar_lea.vmem %s231_s2, 512  ;;  %p268_p1 = scmp.lt.s32.totalorder %s231_s2, %s231_s2 }
   0xd   :  { %243 = vmatmul.mubr.msk.f32.vlgmr.msra.gmra.mxu0 %vm37_vm1, %v20_v20  ;;  %256 = vmatmul.mubr.msk.f32.vlgmr.msra.gmra.mxu1 %vm37_vm1, %v20_v20  ;;  %p264_p0 = scmp.ne.s32.totalorder %s231_s2, %s263_s3  ;;  %p269_p2 = scmp.lt.s32.totalorder %s263_s3, %s263_s3 }
   0xe   :  { %262 = vset.pattern.permute.xlu0 %v286_v23 }
   0xf   :  { %34 = vperm.xlu0 %262, %v21_v22   ;;  %p270_p3 = por %p269_p2, %p268_p1 }
  0x11   :  { %p271_p4 = pnand %p270_p3, %p264_p0 }
  0x8a   :  { %v35_v24 = vpop.permute.xlu0 %34 }
  0xcd   :  { %v114_v25 = vpop.f32.mrf.mxu0  ;;  %v211_v27 = vpop.f32.mrf.mxu1 }
  0xce   :  { %v115_v28 = vadd.f32 %v114_v25, %v35_v24  ;;  %v212_v29 = vadd.f32 %v211_v27, %v35_v24 }
  0xcf   :  { %v116_v30 = vpop.f32.mrf.mxu0  ;;  %v213_v31 = vpop.f32.mrf.mxu1 }
  0xd0   :  { %vm119_vm2 = vcmp.ge.f32.partialorder %v115_v28, 0.0  ;;  %v122_v32 = vmul.f32 %v121_v26, %v115_v28  ;;  %vm216_vm3 = vcmp.ge.f32.partialorder %v212_v29, 0.0  ;;  %v218_v33 = vmul.f32 %v212_v29, %v121_v26 }
  0xd1   :  { %v117_v34 = vadd.f32 %v116_v30, %v35_v24  ;;  %v214_v35 = vadd.f32 %v213_v31, %v35_v24 }
  0xd2   :  { %v124_v36 = vsel %vm119_vm2, %v115_v28, %v122_v32  ;;  %v220_v37 = vsel %vm216_vm3, %v212_v29, %v218_v33 }
  0xd3   :  { %126 = vst [vmem:[#allocation3] sm:$0xff] %v124_v36  ;;  %223 = vst [vmem:[#allocation3 + $0x10] sm:$0xff] %v220_v37  ;;  %vm120_vm4 = vcmp.ge.f32.partialorder %v117_v34, 0.0  ;;  %v123_v38 = vmul.f32 %v121_v26, %v117_v34  ;;  %vm217_vm5 = vcmp.ge.f32.partialorder %v214_v35, 0.0  ;;  %v219_v39 = vmul.f32 %v214_v35, %v121_v26 }
  0xd5   :  { %v125_v40 = vsel %vm120_vm4, %v117_v34, %v123_v38  ;;  %v221_v41 = vsel %vm217_vm5, %v214_v35, %v219_v39 }
  0xd6   :  { %127 = vst [vmem:[#allocation3 + $0x8] sm:$0xff] %v125_v40  ;;  %224 = vst [vmem:[#allocation3 + $0x18] sm:$0xff] %v221_v41 }
  0xd7   :  { %274 = shalt.err (!%p271_p4)
}
  0xd8   :  { %s288_s8 = smov 256   ;;  %s289_s9 = smov 16  }
  0xd9   :  { %236 = dma.vmem_to_hbm [thread:$0]  %s231_s2, 512, %s391_s4, [#allocation4], %s288_s8, %s288_s8, %s289_s9  }
  0xda   :  { %283 = dma.done.wait [#allocation4], 512  }
  0xdb   :  { %284 = vsyncadd [#allocation4], 4294966784 }
  0xdc   :  { %240 = vsyncpa [#allocation4], 1 }

</bundles_post_ra>
